<compile_context>
chip_gen: v6e
topology: v6e:2x2x1
jax: 0.10.0
libtpu: 0.0.40
codegen_flags: <defaults>
</compile_context>

<pallas_src>
import functools

import jax
import jax.numpy as jnp
import numpy as np
from jax.experimental import pallas as pl
from jax.experimental.pallas import tpu as pltpu


# ---------------------------------------------------------------------------
# Kernels
# ---------------------------------------------------------------------------
def _time_mlp_cs_kernel(x_ref, g1_ref, s1_ref, g2_ref, s2_ref,
                        w1_ref, w2_ref, o_ref):
    """use_time=True path: one (batch, N-tile) block of the fused CSL MLP.

    ctx-dependent terms (sigmoid gates, bias/hyper shifts) are precomputed in
    the wrapper; here they are a single broadcast multiply-add per matmul.
    """
    x = x_ref[0]                 # (TN, d_in) in compute dtype (bf16 by default)
    w1 = w1_ref[...]
    w2 = w2_ref[...]

    # fc1: (x @ W1) * gate1 + (b1*gate1 + ctx @ Wb1)     -- f32 accumulation
    h = jnp.dot(x, w1, preferred_element_type=jnp.float32)
    h = h * g1_ref[0] + s1_ref[0]            # (1, d_h) broadcasts over rows
    h = jnp.maximum(h, 0.0)                  # ReLU; dropout(p=0.0) -> identity
    # TODO(synk): stochastic dropout (p>0, training mode) not implemented here.

    # fc2: (h @ W2) * gate2 + (b2*gate2 + ctx @ Wb2)
    o = jnp.dot(h.astype(w2.dtype), w2, preferred_element_type=jnp.float32)
    o = o * g2_ref[0] + s2_ref[0]
    o_ref[0] = o.astype(o_ref.dtype)
    # NOTE: with tiny d_out (<128 lanes) stores are masked; TN is kept large so
    # the sublane dimension amortizes them.


def _time_mlp_linear_kernel(x_ref, w1_ref, b1_ref, w2_ref, b2_ref, o_ref):
    """use_time=False path: Linear -> ReLU -> Linear, fused per (batch, N-tile)."""
    x = x_ref[0]                 # (TN, d_in)
    w1 = w1_ref[...]
    w2 = w2_ref[...]
    h = jnp.dot(x, w1, preferred_element_type=jnp.float32) + b1_ref[...]
    h = jnp.maximum(h, 0.0)
    o = jnp.dot(h.astype(w2.dtype), w2, preferred_element_type=jnp.float32) + b2_ref[...]
    o_ref[0] = o.astype(o_ref.dtype)


# ---------------------------------------------------------------------------
# Wrapper helpers
# ---------------------------------------------------------------------------
def _pick_tn(n, tn_max):
    """Largest legal row tile: full N if it fits, else a multiple of 8 rows."""
    if n <= tn_max:
        return n                       # equals array dim -> always legal
    return max((tn_max // 8) * 8, 8)   # sublane-aligned tile


def _vmem_limit_bytes(tn, d_in, d_h, d_out, cbytes, obytes):
    """Scoped-VMEM request derived from the actual block sizes.

    Budget = double-buffered x/out blocks + f32 (TN, d_h) intermediate
    + resident weights/gates, with 2x headroom; clamped to [32 MiB, 48 MiB]
    (raises v5e's 16 MiB default, stays under v7x's 64 MiB physical VMEM).
    """
    est = (2 * tn * d_in * cbytes            # double-buffered x blocks
           + 2 * tn * d_out * obytes         # double-buffered out blocks
           + tn * d_h * 4                    # f32 intermediate h
           + (d_in * d_h + d_h * d_out) * cbytes   # weights (resident)
           + 8 * (d_h + d_out) * 4)          # gates / shifts / biases
    return int(min(max(2 * est + (4 << 20), 32 << 20), 48 << 20))


# ---------------------------------------------------------------------------
# Wrappers
# ---------------------------------------------------------------------------
@functools.partial(jax.jit, static_argnames=("compute_dtype", "tn"))
def time_mlp_forward_use_time(x, ctx, params, *,
                              compute_dtype=jnp.bfloat16, tn=1024):
    B, N, d_in = x.shape
    d_h = params["w1"].shape[1]
    d_out = params["w2"].shape[1]
    out_dtype = x.dtype

    # --- hoist ctx-dependent gating out of the kernel (M=1 matmuls, f32) ---
    f32 = jnp.float32
    ctx32 = ctx.astype(f32)
    gate1 = jax.nn.sigmoid(ctx32 @ params["wg1"].astype(f32)
                           + params["bg1"].astype(f32))            # (B, 1, d_h)
    shift1 = params["b1"].astype(f32) * gate1 + ctx32 @ params["wb1"].astype(f32)
    gate2 = jax.nn.sigmoid(ctx32 @ params["wg2"].astype(f32)
                           + params["bg2"].astype(f32))            # (B, 1, d_out)
    shift2 = params["b2"].astype(f32) * gate2 + ctx32 @ params["wb2"].astype(f32)

    # --- compute-dtype casts for the MXU (accumulation stays f32 in-kernel) ---
    x_c = x.astype(compute_dtype)
    w1_c = params["w1"].astype(compute_dtype)
    w2_c = params["w2"].astype(compute_dtype)

    tn_eff = _pick_tn(N, tn)
    n_tiles = pl.cdiv(N, tn_eff)

    in_specs = [
        pl.BlockSpec((1, tn_eff, d_in), lambda b, n: (b, n, 0)),   # x tile
        pl.BlockSpec((1, 1, d_h),   lambda b, n: (b, 0, 0)),       # gate1
        pl.BlockSpec((1, 1, d_h),   lambda b, n: (b, 0, 0)),       # shift1
        pl.BlockSpec((1, 1, d_out), lambda b, n: (b, 0, 0)),       # gate2
        pl.BlockSpec((1, 1, d_out), lambda b, n: (b, 0, 0)),       # shift2
        pl.BlockSpec((d_in, d_h),   lambda b, n: (0, 0)),          # W1
        pl.BlockSpec((d_h, d_out),  lambda b, n: (0, 0)),          # W2
    ]
    out_spec = pl.BlockSpec((1, tn_eff, d_out), lambda b, n: (b, n, 0))

    return pl.pallas_call(
        _time_mlp_cs_kernel,
        out_shape=jax.ShapeDtypeStruct((B, N, d_out), out_dtype),
        grid_spec=pltpu.PrefetchScalarGridSpec(
            num_scalar_prefetch=0,
            grid=(B, n_tiles),
            in_specs=in_specs,
            out_specs=out_spec,
        ),
        compiler_params=pltpu.CompilerParams(
            dimension_semantics=("parallel", "parallel"),
            vmem_limit_bytes=_vmem_limit_bytes(
                tn_eff, d_in, d_h, d_out,
                jnp.dtype(compute_dtype).itemsize, jnp.dtype(out_dtype).itemsize),
        ),
    )(x_c, gate1, shift1, gate2, shift2, w1_c, w2_c)


@functools.partial(jax.jit, static_argnames=("compute_dtype", "tn"))
def time_mlp_forward_plain(x, params, *, compute_dtype=jnp.bfloat16, tn=1024):
    B, N, d_in = x.shape
    d_h = params["w1"].shape[1]
    d_out = params["w2"].shape[1]
    out_dtype = x.dtype

    x_c = x.astype(compute_dtype)
    w1_c = params["w1"].astype(compute_dtype)
    w2_c = params["w2"].astype(compute_dtype)
    b1 = params["b1"].astype(jnp.float32)
    b2 = params["b2"].astype(jnp.float32)

    tn_eff = _pick_tn(N, tn)
    n_tiles = pl.cdiv(N, tn_eff)

    in_specs = [
        pl.BlockSpec((1, tn_eff, d_in), lambda b, n: (b, n, 0)),   # x tile
        pl.BlockSpec((d_in, d_h),  lambda b, n: (0, 0)),           # W1
        pl.BlockSpec((1, d_h),     lambda b, n: (0, 0)),           # b1
        pl.BlockSpec((d_h, d_out), lambda b, n: (0, 0)),           # W2
        pl.BlockSpec((1, d_out),   lambda b, n: (0, 0)),           # b2
    ]
    out_spec = pl.BlockSpec((1, tn_eff, d_out), lambda b, n: (b, n, 0))

    return pl.pallas_call(
        _time_mlp_linear_kernel,
        out_shape=jax.ShapeDtypeStruct((B, N, d_out), out_dtype),
        grid_spec=pltpu.PrefetchScalarGridSpec(
            num_scalar_prefetch=0,
            grid=(B, n_tiles),
            in_specs=in_specs,
            out_specs=out_spec,
        ),
        compiler_params=pltpu.CompilerParams(
            dimension_semantics=("parallel", "parallel"),
            vmem_limit_bytes=_vmem_limit_bytes(
                tn_eff, d_in, d_h, d_out,
                jnp.dtype(compute_dtype).itemsize, jnp.dtype(out_dtype).itemsize),
        ),
    )(x_c, w1_c, b1, w2_c, b2)


# ---------------------------------------------------------------------------
# Pure-JAX reference (mirrors the PyTorch module exactly)
# ---------------------------------------------------------------------------
def ref_use_time(x, ctx, p):
    def csl(x, ctx, w, b, wg, bg, wb):
        return (x @ w + b) * jax.nn.sigmoid(ctx @ wg + bg) + ctx @ wb
    h = csl(x, ctx, p["w1"], p["b1"], p["wg1"], p["bg1"], p["wb1"])
    h = jnp.maximum(h, 0.0)
    return csl(h, ctx, p["w2"], p["b2"], p["wg2"], p["bg2"], p["wb2"])


def ref_plain(x, p):
    h = jnp.maximum(x @ p["w1"] + p["b1"], 0.0)
    return h @ p["w2"] + p["b2"]


# ---------------------------------------------------------------------------
# Deterministic parameter init (shapes as in TimeMLP.__init__)
# ---------------------------------------------------------------------------
def init_params(key, d_in, d_h, d_out, d_ctx):
    ks = jax.random.split(key, 12)
    s = lambda fan_in: 1.0 / np.sqrt(fan_in)
    return {
        # fc1 = ConcatSquashLinear(d_in, d_h, d_ctx)
        "w1":  jax.random.uniform(ks[0], (d_in, d_h), jnp.float32, -s(d_in), s(d_in)),
        "b1":  jax.random.uniform(ks[1], (1, d_h),    jnp.float32, -s(d_in), s(d_in)),
        "wg1": jax.random.uniform(ks[2], (d_ctx, d_h), jnp.float32, -s(d_ctx), s(d_ctx)),
        "bg1": jax.random.uniform(ks[3], (1, d_h),     jnp.float32, -s(d_ctx), s(d_ctx)),
        "wb1": jax.random.uniform(ks[4], (d_ctx, d_h), jnp.float32, -s(d_ctx), s(d_ctx)),
        # fc2 = ConcatSquashLinear(d_h, d_out, d_ctx)
        "w2":  jax.random.uniform(ks[5], (d_h, d_out), jnp.float32, -s(d_h), s(d_h)),
        "b2":  jax.random.uniform(ks[6], (1, d_out),   jnp.float32, -s(d_h), s(d_h)),
        "wg2": jax.random.uniform(ks[7], (d_ctx, d_out), jnp.float32, -s(d_ctx), s(d_ctx)),
        "bg2": jax.random.uniform(ks[8], (1, d_out),     jnp.float32, -s(d_ctx), s(d_ctx)),
        "wb2": jax.random.uniform(ks[9], (d_ctx, d_out), jnp.float32, -s(d_ctx), s(d_ctx)),
    }


if __name__ == "__main__":
    key = jax.random.PRNGKey(0)
    k_x, k_ctx, k_p = jax.random.split(key, 3)

    # Small shapes consistent with the module: x: (B, N, dim_in), ctx: (B, 1, dim_ctx)
    B, N = 2, 64
    dim_in, dim_h, dim_out, dim_ctx = 4, 32, 4, 8

    x = jax.random.normal(k_x, (B, N, dim_in), jnp.float32)
    ctx = jax.random.normal(k_ctx, (B, 1, dim_ctx), jnp.float32)
    params = init_params(k_p, dim_in, dim_h, dim_out, dim_ctx)

    # ---- use_time=True path (ConcatSquashLinear MLP) ----
    ref_t = np.asarray(ref_use_time(x, ctx, params))
    # f32 compute, tiled over N (grid = (2, 4)): tight check
    out_t32 = jax.block_until_ready(
        time_mlp_forward_use_time(x, ctx, params, compute_dtype=jnp.float32, tn=16))
    np.testing.assert_allclose(np.asarray(out_t32), ref_t, rtol=1e-5, atol=1e-5)
    # default bf16-MXU / f32-accumulate path: looser tolerance for bf16 rounding
    out_tbf = jax.block_until_ready(time_mlp_forward_use_time(x, ctx, params))
    np.testing.assert_allclose(np.asarray(out_tbf), ref_t, rtol=5e-2, atol=5e-2)

    # ---- use_time=False path (plain Linear MLP) reuses w1/b1/w2/b2 ----
    ref_p = np.asarray(ref_plain(x, params))
    out_p32 = jax.block_until_ready(
        time_mlp_forward_plain(x, params, compute_dtype=jnp.float32, tn=16))
    np.testing.assert_allclose(np.asarray(out_p32), ref_p, rtol=1e-5, atol=1e-5)
    out_pbf = jax.block_until_ready(time_mlp_forward_plain(x, params))
    np.testing.assert_allclose(np.asarray(out_pbf), ref_p, rtol=5e-2, atol=5e-2)

    print("KERNEL_OK")
</pallas_src>

<mosaic_0001>
module attributes {stable_mosaic.version = 11 : i64} {
  func.func @_time_mlp_cs_kernel(%arg0: i32, %arg1: i32, %arg2: memref<1x16x4xf32, #tpu.memory_space<vmem>>, %arg3: memref<1x1x32xf32, #tpu.memory_space<vmem>>, %arg4: memref<1x1x32xf32, #tpu.memory_space<vmem>>, %arg5: memref<1x1x4xf32, #tpu.memory_space<vmem>>, %arg6: memref<1x1x4xf32, #tpu.memory_space<vmem>>, %arg7: memref<4x32xf32, #tpu.memory_space<vmem>>, %arg8: memref<32x4xf32, #tpu.memory_space<vmem>>, %arg9: memref<1x16x4xf32, #tpu.memory_space<vmem>>) attributes {dimension_semantics = [#tpu.dimension_semantics<parallel>, #tpu.dimension_semantics<parallel>], iteration_bounds = array<i64: 2, 4>, scalar_prefetch = 0 : i64, scratch_operands = 0 : i64, tpu.core_type = #tpu.core_type<tc>, window_params = [{transform_indices = @transform_0, window_bounds = array<i64: 1, 16, 4>}, {transform_indices = @transform_1, window_bounds = array<i64: 1, 1, 32>}, {transform_indices = @transform_2, window_bounds = array<i64: 1, 1, 32>}, {transform_indices = @transform_3, window_bounds = array<i64: 1, 1, 4>}, {transform_indices = @transform_4, window_bounds = array<i64: 1, 1, 4>}, {pipeline_mode = #tpu.pipeline_mode<synchronous>, transform_indices = @transform_5, window_bounds = array<i64: 4, 32>}, {pipeline_mode = #tpu.pipeline_mode<synchronous>, transform_indices = @transform_6, window_bounds = array<i64: 32, 4>}, {transform_indices = @transform_7, window_bounds = array<i64: 1, 16, 4>}]} {
    %c0 = arith.constant 0 : index
    %c0_0 = arith.constant 0 : index
    %c0_1 = arith.constant 0 : index
    %0 = vector.load %arg2[%c0, %c0_0, %c0_1] : memref<1x16x4xf32, #tpu.memory_space<vmem>>, vector<1x16x4xf32>
    %1 = vector.shape_cast %0 : vector<1x16x4xf32> to vector<16x4xf32>
    %c0_2 = arith.constant 0 : index
    %c0_3 = arith.constant 0 : index
    %2 = vector.load %arg7[%c0_2, %c0_3] : memref<4x32xf32, #tpu.memory_space<vmem>>, vector<4x32xf32>
    %c0_4 = arith.constant 0 : index
    %c0_5 = arith.constant 0 : index
    %3 = vector.load %arg8[%c0_4, %c0_5] : memref<32x4xf32, #tpu.memory_space<vmem>>, vector<32x4xf32>
    %cst = arith.constant dense<0.000000e+00> : vector<16x32xf32>
    %4 = tpu.matmul %1, %2, %cst {dimension_numbers = #tpu.dot_dimension_numbers<[1], [0], [0], [1], [0, 0, 1, 1], [], []>} : vector<16x4xf32>, vector<4x32xf32>, vector<16x32xf32> -> vector<16x32xf32>
    %c0_6 = arith.constant 0 : index
    %c0_7 = arith.constant 0 : index
    %c0_8 = arith.constant 0 : index
    %5 = vector.load %arg3[%c0_6, %c0_7, %c0_8] : memref<1x1x32xf32, #tpu.memory_space<vmem>>, vector<1x1x32xf32>
    %6 = vector.shape_cast %5 : vector<1x1x32xf32> to vector<1x32xf32>
    %7 = vector.broadcast %6 : vector<1x32xf32> to vector<16x32xf32>
    %8 = arith.mulf %4, %7 : vector<16x32xf32>
    %c0_9 = arith.constant 0 : index
    %c0_10 = arith.constant 0 : index
    %c0_11 = arith.constant 0 : index
    %9 = vector.load %arg4[%c0_9, %c0_10, %c0_11] : memref<1x1x32xf32, #tpu.memory_space<vmem>>, vector<1x1x32xf32>
    %10 = vector.shape_cast %9 : vector<1x1x32xf32> to vector<1x32xf32>
    %11 = vector.broadcast %10 : vector<1x32xf32> to vector<16x32xf32>
    %12 = arith.addf %8, %11 : vector<16x32xf32>
    %cst_12 = arith.constant 0.000000e+00 : f32
    %13 = vector.broadcast %cst_12 : f32 to vector<16x32xf32>
    %14 = arith.maximumf %12, %13 : vector<16x32xf32>
    %cst_13 = arith.constant dense<0.000000e+00> : vector<16x4xf32>
    %15 = tpu.matmul %14, %3, %cst_13 {dimension_numbers = #tpu.dot_dimension_numbers<[1], [0], [0], [1], [0, 0, 1, 1], [], []>} : vector<16x32xf32>, vector<32x4xf32>, vector<16x4xf32> -> vector<16x4xf32>
    %c0_14 = arith.constant 0 : index
    %c0_15 = arith.constant 0 : index
    %c0_16 = arith.constant 0 : index
    %16 = vector.load %arg5[%c0_14, %c0_15, %c0_16] : memref<1x1x4xf32, #tpu.memory_space<vmem>>, vector<1x1x4xf32>
    %17 = vector.shape_cast %16 : vector<1x1x4xf32> to vector<1x4xf32>
    %18 = vector.broadcast %17 : vector<1x4xf32> to vector<16x4xf32>
    %19 = arith.mulf %15, %18 : vector<16x4xf32>
    %c0_17 = arith.constant 0 : index
    %c0_18 = arith.constant 0 : index
    %c0_19 = arith.constant 0 : index
    %20 = vector.load %arg6[%c0_17, %c0_18, %c0_19] : memref<1x1x4xf32, #tpu.memory_space<vmem>>, vector<1x1x4xf32>
    %21 = vector.shape_cast %20 : vector<1x1x4xf32> to vector<1x4xf32>
    %22 = vector.broadcast %21 : vector<1x4xf32> to vector<16x4xf32>
    %23 = arith.addf %19, %22 : vector<16x4xf32>
    %c0_20 = arith.constant 0 : index
    %c0_21 = arith.constant 0 : index
    %c0_22 = arith.constant 0 : index
    %24 = vector.load %arg9[%c0_20, %c0_21, %c0_22] : memref<1x16x4xf32, #tpu.memory_space<vmem>>, vector<1x16x4xf32>
    %25 = vector.shape_cast %24 : vector<1x16x4xf32> to vector<16x4xf32>
    %26 = vector.shape_cast %23 : vector<16x4xf32> to vector<1x16x4xf32>
    tpu.vector_store %arg9[%c0_20, %c0_21, %c0_22], %26 {strides = array<i32>} : memref<1x16x4xf32, #tpu.memory_space<vmem>>, vector<1x16x4xf32>,
    return
  }
  func.func @transform_0(%arg0: i32, %arg1: i32) -> (i32, i32, i32) {
    %c0_i32 = arith.constant 0 : i32
    %c0_i32_0 = arith.constant 0 : i32
    return %arg0, %arg1, %c0_i32 : i32, i32, i32
  }
  func.func @transform_1(%arg0: i32, %arg1: i32) -> (i32, i32, i32) {
    %c0_i32 = arith.constant 0 : i32
    %c0_i32_0 = arith.constant 0 : i32
    %c0_i32_1 = arith.constant 0 : i32
    return %arg0, %c0_i32, %c0_i32_0 : i32, i32, i32
  }
  func.func @transform_2(%arg0: i32, %arg1: i32) -> (i32, i32, i32) {
    %c0_i32 = arith.constant 0 : i32
    %c0_i32_0 = arith.constant 0 : i32
    %c0_i32_1 = arith.constant 0 : i32
    return %arg0, %c0_i32, %c0_i32_0 : i32, i32, i32
  }
  func.func @transform_3(%arg0: i32, %arg1: i32) -> (i32, i32, i32) {
    %c0_i32 = arith.constant 0 : i32
    %c0_i32_0 = arith.constant 0 : i32
    %c0_i32_1 = arith.constant 0 : i32
    return %arg0, %c0_i32, %c0_i32_0 : i32, i32, i32
  }
  func.func @transform_4(%arg0: i32, %arg1: i32) -> (i32, i32, i32) {
    %c0_i32 = arith.constant 0 : i32
    %c0_i32_0 = arith.constant 0 : i32
    %c0_i32_1 = arith.constant 0 : i32
    return %arg0, %c0_i32, %c0_i32_0 : i32, i32, i32
  }
  func.func @transform_5(%arg0: i32, %arg1: i32) -> (i32, i32) {
    %c0_i32 = arith.constant 0 : i32
    %c0_i32_0 = arith.constant 0 : i32
    %c0_i32_1 = arith.constant 0 : i32
    return %c0_i32, %c0_i32_0 : i32, i32
  }
  func.func @transform_6(%arg0: i32, %arg1: i32) -> (i32, i32) {
    %c0_i32 = arith.constant 0 : i32
    %c0_i32_0 = arith.constant 0 : i32
    %c0_i32_1 = arith.constant 0 : i32
    return %c0_i32, %c0_i32_0 : i32, i32
  }
  func.func @transform_7(%arg0: i32, %arg1: i32) -> (i32, i32, i32) {
    %c0_i32 = arith.constant 0 : i32
    %c0_i32_0 = arith.constant 0 : i32
    return %arg0, %arg1, %c0_i32 : i32, i32, i32
  }
}

</mosaic_0001>

<bundles_post_ra>
// kernel: time_mlp_forward_use_time.1
= control target key start
LH: loop header
LB: loop body
LE: loop exit
PB: predicated region body
PF: predicated region fallthrough
CT: control target
= control target key end

     0   :  { %s882_s24 = smov 0   ;;  %s884_s25 = smov 0   ;;  %s978_s0 = inlined_call_operand.vmem [shape: f32[2,64,4], index: 0, kind: input, shape index: {}]   ;;  %s979_s1 = inlined_call_operand.vmem [shape: f32[2,1,32], index: 1, kind: input, shape index: {}]   ;;  %s980_s2 = inlined_call_operand.vmem [shape: f32[2,1,32], index: 2, kind: input, shape index: {}]   ;;  %s981_s3 = inlined_call_operand.vmem [shape: f32[2,1,4], index: 3, kind: input, shape index: {}]   ;;  %s982_s4 = inlined_call_operand.vmem [shape: f32[2,1,4], index: 4, kind: input, shape index: {}]   ;;  %s983_s5 = inlined_call_operand.vmem [shape: f32[4,32], index: 5, kind: input, shape index: {}]   ;;  %s984_s6 = inlined_call_operand.vmem [shape: f32[32,4], index: 6, kind: input, shape index: {}]   ;;  %s985_s7 = inlined_call_operand.vmem [shape: f32[2,64,4], index: 7, kind: output, shape index: {}]  }
   0x1   :  { %s886_s26 = smov 0   ;;  %s888_s27 = smov 0  }
   0x2   :  { %s890_s28 = smov 0  }
   0x3 LB: > { %s26_s29 = sadd.s32 1, %s832_s26  ;;  %s29_s30 = sadd.s32 1, %s836_s27  ;;  %s840_s28 = sphi %s890_s28, %s17_s28   ;;  %s836_s27 = sphi %s888_s27, %s989_s27   ;;  %s832_s26 = sphi %s886_s26, %s988_s26   ;;  %s828_s25 = sphi %s884_s25, %s987_s25   ;;  %s824_s24 = sphi %s882_s24, %s986_s24  }
   0x4   : > { %p27_p0 = scmp.ge.s32.totalorder %s26_s29, 4  ;;  %p719_p1 = scmp.ge.s32.totalorder %s840_s28, 1 }
   0x5   : > { %p290_p2 = scmp.lt.s32.totalorder %s840_s28, 9 }
   0x6   : > { %s991_s29 = smov (%p27_p0, %s26_s29), 0  ;;  %s993_s30 = smov (!%p27_p0, %s29_s30), %s836_s27 }
   0x7   : > { %p291_p3 = pnand %p719_p1, %p290_p2  ;;  %p31_p4 = scmp.ge.s32.totalorder %s993_s30, 2 }
   0x8   : > { %s720_s10 = sshll.u32 (!%p291_p3), %s824_s24, 1  ;;  %p343_p5 = scmp.lt.s32.totalorder (!%p291_p3), %s828_s25, 1 }
   0x9   : > { %s995_s30 = smov (%p31_p4, %s993_s30), 0  ;;  %294 = sbr.rel (%p291_p3) target bundleno = 423 (0x1a7), region = 48 }
   0xa   : > { %p345_p6 = scmp.lt.s32.totalorder (!%p291_p3), %s720_s10, 7 }
   0xe   : > { %v376_v0 = vld [vmem:[%s983_s5] sm:$0xf]  ;;  %vm388_vm0 = vcmask 1043456   ;;  %s997_s25 = smov (!%p343_p5, %s828_s25), 1  ;;  %s999_s10 = smov (!%p345_p6, %s720_s10), 7  ;;  %vm381_vm1 = vcmask 31744  }
   0xf   : > { %746 = vmatprep.subr.msk.mxu0 %vm388_vm0, %v376_v0  ;;  %s721_s11 = sshll.u32 %s997_s25, 3  ;;  %v380_v3 = vld [vmem:[%s984_s6 + $0x18] sm:$0xff]  ;;  %v379_v4 = vld [vmem:[%s984_s6 + $0x10] sm:$0xff]  ;;  %v378_v5 = vld [vmem:[%s984_s6 + $0x8] sm:$0xff]  ;;  %s357_s15 = scalar_lea.vmem %s980_s2, %s997_s25  ;;  %vm487_vm2 = vcmask 261120  }
  0x10   : > { %747 = vmatpush3.msk.msra.mxu0 %vm388_vm0, %v376_v0  ;;  %s918_s12 = sadd.s32 %s721_s11, %s999_s10  ;;  %751 = vmatprep.subr.mxu1 %v380_v3  ;;  %v377_v6 = vld [vmem:[%s984_s6] sm:$0xff]  ;;  %s354_s10 = scalar_lea.vmem %s979_s1, %s997_s25 }
  0x11   : > { %s722_s13 = sshll.u32 %s918_s12, 3  ;;  %752 = vmatpush3.msra.mxu1 %v380_v3  ;;  %v729_v7 = vld [vmem:[%s354_s10] ss:$0 sm:$0xff]  ;;  %s360_s18 = scalar_lea.vmem %s981_s3, %s997_s25 }
  0x12   : > { %s350_s16 = scalar_lea.vmem %s978_s0, %s722_s13  ;;  %753 = vmatprep.subr.mxu1 %v379_v4  ;;  %v730_v10 = vld [vmem:[%s357_s15] ss:$0 sm:$0xff]  ;;  %s363_s21 = scalar_lea.vmem %s982_s4, %s997_s25 }
  0x13   : > { %v374_v1 = vld [vmem:[%s350_s16] sm:$0xff]  ;;  %v375_v2 = vld [vmem:[%s350_s16 + $0x8] sm:$0xff]  ;;  %754 = vmatpush3.msra.mxu1 %v379_v4  ;;  %s372_s24 = scalar_lea.vmem %s985_s7, %s722_s13 }
  0x14   : > { %748 = vmatprep.mubr.msk.f32.mxu0 %vm381_vm1, %v374_v1  ;;  %755 = vmatprep.subr.mxu1 %v378_v5  ;;  %v733_v17 = vld [vmem:[%s360_s18] ss:$0 sm:$0xff] }
  0x15   : > { %749 = vmatmul.mubr.msk.f32.vlgmr.msra.gmra.mxu0 %vm381_vm1, %v375_v2  ;;  %756 = vmatpush3.msra.mxu1 %v378_v5  ;;  %v734_v19 = vld [vmem:[%s363_s21] ss:$0 sm:$0xff] }
  0x16   : > { %757 = vmatprep.subr.mxu1 %v377_v6 }
  0x17   : > { %758 = vmatpush3.msra.mxu1 %v377_v6 }
  0xd5   : > { %v750_v8 = vpop.f32.mrf.mxu0 }
  0xd6   : > { %v475_v9 = vmul.f32 %v750_v8, %v729_v7 }
  0xd7   : > { %v458_v11 = vpop.f32.mrf.mxu0 }
  0xd8   : > { %v474_v12 = vmul.f32 %v729_v7, %v458_v11  ;;  %v484_v13 = vadd.f32 %v730_v10, %v475_v9 }
  0xda   : > { %v483_v14 = vadd.f32 %v730_v10, %v474_v12  ;;  %v486_v16 = vmax.f32 %v484_v13, 0.0 }
  0xdc   : > { %v485_v15 = vmax.f32 %v483_v14, 0.0 }
  0xde   : > { %759 = vmatprep.mubr.msk.f32.mxu1 %vm487_vm2, %v485_v15 }
  0xdf   : > { %760 = vmatmul.mubr.msk.f32.vlgmr.msra.gmra.mxu1 %vm487_vm2, %v486_v16 }
 0x19f   : > { %v761_v18 = vpop.f32.mrf.mxu1 }
 0x1a0   : > { %v577_v20 = vmul.f32 %v761_v18, %v733_v17 }
 0x1a1   : > { %v560_v21 = vpop.f32.mrf.mxu1 }
 0x1a2   : > { %v586_v22 = vadd.f32 %v734_v19, %v577_v20  ;;  %v576_v23 = vmul.f32 %v733_v17, %v560_v21 }
 0x1a4   : > { %588 = vst.msk [vmem:[%s372_s24 + $0x8] sm:$0xff] %vm381_vm1, %v586_v22  ;;  %v585_v24 = vadd.f32 %v734_v19, %v576_v23 }
 0x1a6   : > { %587 = vst.msk [vmem:[%s372_s24] sm:$0xff] %vm381_vm1, %v585_v24 }
 0x1a7 PF: > { %s17_s28 = sadd.s32 1, %s840_s28   ;;  %s986_s24 = smov %s832_s26 }
 0x1a8   : > { %p14_p7 = scmp.ge.s32.totalorder %s17_s28, 10   ;;  %s987_s25 = smov %s836_s27 }
 0x1a9   : > { %s988_s26 = smov %s991_s29  ;;  %s989_s27 = smov %s995_s30 }
 0x1aa   :  { %16 = sbr.rel (!%p14_p7) target bundleno = 3 (0x3), region = 90 }

</bundles_post_ra>
